<compile_context>
chip_gen: v5e
topology: v5e:2x2
jax: 0.10.0
libtpu: 0.0.40
codegen_flags: <defaults>
</compile_context>

<pallas_src>
import jax
import jax.numpy as jnp
from jax import lax
from jax.experimental import pallas as pl
from jax.experimental.pallas import tpu as pltpu


# --------------------------------- tiling helpers ---------------------------------
def _round_up(a, b):
    return (a + b - 1) // b * b


def _vmem_limit_bytes():
    """Per-generation scoped-VMEM request (leave ~25% headroom for compiler temporaries)."""
    try:
        cap = getattr(pltpu.get_tpu_info(), "vmem_capacity_bytes", 128 * 1024 * 1024)
    except Exception:  # pragma: no cover - defensive (e.g. interpret mode)
        cap = 128 * 1024 * 1024
    return int(min((cap * 3) // 4, 100 * 1024 * 1024))


def _choose_nt(C, n_pad128, comp_bytes, budget, max_nt):
    """Largest multiple of 128 <= max_nt that divides n_pad128 and whose double-buffered
    x tile (2 * C * nt * comp_bytes bytes) fits in `budget`."""
    cap = min(max(128, (max_nt // 128) * 128), n_pad128)
    nt = cap
    while nt > 128:
        if n_pad128 % nt == 0 and 2 * C * nt * comp_bytes <= budget:
            return nt
        nt -= 128
    return 128


# ------------------------------ fused single-pass kernel ------------------------------
def _make_fused_kernel(D, N, nt, n_pad, compute_dtype):
    needs_mask = (n_pad != N)

    def kernel(x_ref, w_ref, b_ref, o_ref, acc_ref, v_ref):
        t = pl.program_id(1)

        @pl.when(t == 0)
        def _init():
            acc_ref[...] = jnp.zeros_like(acc_ref)

        x = x_ref[0]                                                       # (C, nt), bf16/f32
        # One stacked projection per tile: (3D, C) @ (C, nt) -> (3D, nt), f32 accumulation.
        qkv = jnp.dot(w_ref[...], x, preferred_element_type=jnp.float32) + b_ref[...]
        q = qkv[0:D]
        k = qkv[D:2 * D]
        v = qkv[2 * D:3 * D]
        if needs_mask:
            # Zero-padded x columns still pick up the bias (q_pad = bq, k_pad = bk); zero q
            # on padded columns so they never contribute to the energy contraction.
            col = t * nt + lax.broadcasted_iota(jnp.int32, (D, nt), 1)
            q = jnp.where(col < N, q, 0.0)
        # energy[i, j] += sum_n q[i, n] * k[j, n]  -- contract over the lane (N) axis directly,
        # no transpose is materialized.
        acc_ref[...] += lax.dot_general(
            q.astype(compute_dtype), k.astype(compute_dtype),
            dimension_numbers=(((1,), (1,)), ((), ())),
            preferred_element_type=jnp.float32)
        # Stash this tile's V; it is only consumed on the last grid step.
        v_ref[:, pl.ds(pl.multiple_of(t * nt, 128), nt)] = v.astype(v_ref.dtype)

        @pl.when(t == pl.num_programs(1) - 1)
        def _finalize():
            e = acc_ref[...]
            e = e - jnp.max(e, axis=-1, keepdims=True)          # stabilized, matches torch softmax
            p = jnp.exp(e)
            attn = p / jnp.sum(p, axis=-1, keepdims=True)
            o_ref[0] = jnp.dot(attn.astype(compute_dtype), v_ref[...],
                               preferred_element_type=jnp.float32).astype(o_ref.dtype)

    return kernel


# ------------------------- two-pass fallback (D*N too big for VMEM) -------------------------
def _make_energy_kernel(D, N, nt, n_pad, compute_dtype):
    needs_mask = (n_pad != N)

    def kernel(x_ref, wqk_ref, bqk_ref, attn_ref, acc_ref):
        t = pl.program_id(1)

        @pl.when(t == 0)
        def _init():
            acc_ref[...] = jnp.zeros_like(acc_ref)

        x = x_ref[0]
        qk = jnp.dot(wqk_ref[...], x, preferred_element_type=jnp.float32) + bqk_ref[...]
        q = qk[0:D]
        k = qk[D:2 * D]
        if needs_mask:
            col = t * nt + lax.broadcasted_iota(jnp.int32, (D, nt), 1)
            q = jnp.where(col < N, q, 0.0)
        acc_ref[...] += lax.dot_general(
            q.astype(compute_dtype), k.astype(compute_dtype),
            dimension_numbers=(((1,), (1,)), ((), ())),
            preferred_element_type=jnp.float32)

        @pl.when(t == pl.num_programs(1) - 1)
        def _finalize():
            e = acc_ref[...]
            e = e - jnp.max(e, axis=-1, keepdims=True)
            p = jnp.exp(e)
            attn_ref[0] = (p / jnp.sum(p, axis=-1, keepdims=True)).astype(attn_ref.dtype)

    return kernel


def _make_apply_kernel(compute_dtype):
    def kernel(x_ref, attn_ref, wv_ref, bv_ref, o_ref):
        x = x_ref[0]
        v = jnp.dot(wv_ref[...], x, preferred_element_type=jnp.float32) + bv_ref[...]
        o_ref[0] = jnp.dot(attn_ref[0].astype(compute_dtype), v.astype(compute_dtype),
                           preferred_element_type=jnp.float32).astype(o_ref.dtype)

    return kernel


# ------------------------------------ forward wrapper ------------------------------------
def self_attn_channel_forward(x, params, *, compute_dtype=jnp.bfloat16, out_dtype=None,
                              max_nt=2048, fused=None):
    B, C, H, W = x.shape
    N = H * W
    D = params["wq"].shape[0]
    out_dtype = x.dtype if out_dtype is None else out_dtype
    comp_bytes = jnp.dtype(compute_dtype).itemsize
    out_bytes = jnp.dtype(out_dtype).itemsize

    vmem_limit = _vmem_limit_bytes()
    n_pad = _round_up(N, 128)
    nt = _choose_nt(C, n_pad, comp_bytes, budget=vmem_limit // 4, max_nt=max_nt)
    n_tiles = n_pad // nt

    # Fused-path VMEM footprint: double-buffered x tile + V scratch + resident output block
    # (counted as 2 buffers) + f32 temp of the final matmul + weights + (D, D) accumulator.
    fused_bytes = (2 * C * nt * comp_bytes
                   + D * n_pad * comp_bytes
                   + 2 * D * n_pad * out_bytes
                   + D * n_pad * 4
                   + 2 * (3 * D * C * comp_bytes + 3 * D * 4)
                   + D * D * 4)
    if fused is None:
        fused = fused_bytes <= vmem_limit

    xf = x.reshape(B, C, N)
    if n_pad != N:
        xf = jnp.pad(xf, ((0, 0), (0, 0), (0, n_pad - N)))
    xf = xf.astype(compute_dtype)

    if fused:
        w = jnp.concatenate([params["wq"], params["wk"], params["wv"]], axis=0).astype(compute_dtype)
        b = jnp.concatenate([params["bq"], params["bk"], params["bv"]], axis=0).astype(jnp.float32)
        cost = pl.CostEstimate(
            flops=int(B * n_pad * (2 * 3 * D * C + 4 * D * D)),
            transcendentals=int(B * D * D),
            bytes_accessed=int(B * C * n_pad * comp_bytes + 3 * D * C * comp_bytes
                               + 3 * D * 4 + B * D * n_pad * out_bytes),
        )
        out = pl.pallas_call(
            _make_fused_kernel(D, N, nt, n_pad, compute_dtype),
            out_shape=jax.ShapeDtypeStruct((B, D, n_pad), out_dtype),
            grid_spec=pltpu.PrefetchScalarGridSpec(
                num_scalar_prefetch=0,
                grid=(B, n_tiles),
                in_specs=[
                    pl.BlockSpec((1, C, nt), lambda bb, t: (bb, 0, t)),      # x tile
                    pl.BlockSpec((3 * D, C), lambda bb, t: (0, 0)),          # stacked Wq|Wk|Wv
                    pl.BlockSpec((3 * D, 1), lambda bb, t: (0, 0)),          # stacked biases
                ],
                out_specs=pl.BlockSpec((1, D, n_pad), lambda bb, t: (bb, 0, 0)),
                scratch_shapes=[pltpu.VMEM((D, D), jnp.float32),             # energy accumulator
                                pltpu.VMEM((D, n_pad), compute_dtype)],      # per-batch V
            ),
            compiler_params=pltpu.CompilerParams(
                dimension_semantics=("parallel", "arbitrary"),
                vmem_limit_bytes=vmem_limit),
            cost_estimate=cost,
        )(xf, w, b)
    else:
        # Two pipelined passes over x (still bf16-streamed, stacked QK weights).
        wqk = jnp.concatenate([params["wq"], params["wk"]], axis=0).astype(compute_dtype)
        bqk = jnp.concatenate([params["bq"], params["bk"]], axis=0).astype(jnp.float32)
        wv = params["wv"].astype(compute_dtype)
        bv = params["bv"].astype(jnp.float32)
        attn = pl.pallas_call(
            _make_energy_kernel(D, N, nt, n_pad, compute_dtype),
            out_shape=jax.ShapeDtypeStruct((B, D, D), jnp.float32),
            grid_spec=pltpu.PrefetchScalarGridSpec(
                num_scalar_prefetch=0,
                grid=(B, n_tiles),
                in_specs=[
                    pl.BlockSpec((1, C, nt), lambda bb, t: (bb, 0, t)),
                    pl.BlockSpec((2 * D, C), lambda bb, t: (0, 0)),
                    pl.BlockSpec((2 * D, 1), lambda bb, t: (0, 0)),
                ],
                out_specs=pl.BlockSpec((1, D, D), lambda bb, t: (bb, 0, 0)),
                scratch_shapes=[pltpu.VMEM((D, D), jnp.float32)],
            ),
            compiler_params=pltpu.CompilerParams(
                dimension_semantics=("parallel", "arbitrary"),
                vmem_limit_bytes=vmem_limit),
        )(xf, wqk, bqk)
        out = pl.pallas_call(
            _make_apply_kernel(compute_dtype),
            out_shape=jax.ShapeDtypeStruct((B, D, n_pad), out_dtype),
            grid_spec=pltpu.PrefetchScalarGridSpec(
                num_scalar_prefetch=0,
                grid=(B, n_tiles),
                in_specs=[
                    pl.BlockSpec((1, C, nt), lambda bb, t: (bb, 0, t)),
                    pl.BlockSpec((1, D, D), lambda bb, t: (bb, 0, 0)),
                    pl.BlockSpec((D, C), lambda bb, t: (0, 0)),
                    pl.BlockSpec((D, 1), lambda bb, t: (0, 0)),
                ],
                out_specs=pl.BlockSpec((1, D, nt), lambda bb, t: (bb, 0, t)),
            ),
            compiler_params=pltpu.CompilerParams(
                dimension_semantics=("parallel", "parallel"),
                vmem_limit_bytes=vmem_limit),
        )(xf, attn, wv, bv)

    if n_pad != N:
        out = out[:, :, :N]
    return out.reshape(B, D, H, W)


# ------------------------------------ pure-JAX reference ------------------------------------
def self_attn_channel_reference(x, params):
    B, C, H, W = x.shape
    N = H * W
    xf = x.reshape(B, C, N).astype(jnp.float32)
    q = jnp.einsum('dc,bcn->bdn', params["wq"], xf) + params["bq"][None]
    k = jnp.einsum('dc,bcn->bdn', params["wk"], xf) + params["bk"][None]
    v = jnp.einsum('dc,bcn->bdn', params["wv"], xf) + params["bv"][None]
    energy = jnp.einsum('bin,bjn->bij', q, k)
    attn = jax.nn.softmax(energy, axis=-1)
    out = jnp.einsum('bij,bjn->bin', attn, v)
    return out.reshape(B, -1, H, W).astype(jnp.float32)


def make_params(key, in_dim, out_dim):
    out_dim = max(out_dim, 1)
    ks = jax.random.split(key, 6)
    return {
        # 1x1 conv weights stored as (out_ch, in_ch); biases as (out_ch, 1)
        "wq": 0.1 * jax.random.normal(ks[0], (out_dim, in_dim), jnp.float32),
        "bq": 0.1 * jax.random.normal(ks[1], (out_dim, 1), jnp.float32),
        "wk": 0.1 * jax.random.normal(ks[2], (out_dim, in_dim), jnp.float32),
        "bk": 0.1 * jax.random.normal(ks[3], (out_dim, 1), jnp.float32),
        "wv": 0.1 * jax.random.normal(ks[4], (out_dim, in_dim), jnp.float32),
        "bv": 0.1 * jax.random.normal(ks[5], (out_dim, 1), jnp.float32),
        # self.gamma and self.x_conv are unused in forward(); intentionally omitted.
    }


if __name__ == "__main__":
    key = jax.random.PRNGKey(0)

    def check(x, params, *, tol, **kw):
        y = self_attn_channel_forward(x, params, **kw)
        jax.block_until_ready(y)
        y_ref = self_attn_channel_reference(x, params)
        assert y.shape == y_ref.shape
        err = float(jnp.max(jnp.abs(y.astype(jnp.float32) - y_ref)))
        assert jnp.allclose(y.astype(jnp.float32), y_ref, atol=tol, rtol=tol), err

    # 1) Shape consistent with the module: B=2, C0=4, 16x16 spatial, out_dim = in_dim.
    B, C, H, W = 2, 4, 16, 16
    kx, kp, k2 = jax.random.split(key, 3)
    x = jax.random.normal(kx, (B, C, H, W), jnp.float32)
    params = make_params(kp, C, C)
    check(x, params, tol=1e-4, compute_dtype=jnp.float32)   # exact structural check (fused, f32)
    check(x, params, tol=5e-2)                               # default bf16-streamed fast path

    # 2) Multi-tile reduction + masked padded tail: N = 17*17 = 289 -> padded to 384, 3 tiles of 128.
    kx2, kp2 = jax.random.split(k2)
    x2 = jax.random.normal(kx2, (1, 8, 17, 17), jnp.float32)
    params2 = make_params(kp2, 8, 8)
    check(x2, params2, tol=1e-4, compute_dtype=jnp.float32, max_nt=128)
    check(x2, params2, tol=5e-2, max_nt=128)

    # 3) Forced two-pass fallback path (used when D*N does not fit the VMEM budget).
    check(x2, params2, tol=1e-4, compute_dtype=jnp.float32, max_nt=128, fused=False)

    print("KERNEL_OK")
</pallas_src>

<mosaic_0001>
module attributes {stable_mosaic.version = 11 : i64} {
  func.func @kernel(%arg0: i32, %arg1: i32, %arg2: memref<1x4x256xf32, #tpu.memory_space<vmem>>, %arg3: memref<12x4xf32, #tpu.memory_space<vmem>>, %arg4: memref<12x1xf32, #tpu.memory_space<vmem>>, %arg5: memref<1x4x256xf32, #tpu.memory_space<vmem>>, %arg6: memref<4x4xf32, #tpu.memory_space<vmem>>, %arg7: memref<4x256xf32, #tpu.memory_space<vmem>>) attributes {dimension_semantics = [#tpu.dimension_semantics<parallel>, #tpu.dimension_semantics<arbitrary>], iteration_bounds = array<i64: 2, 1>, scalar_prefetch = 0 : i64, scratch_operands = 2 : i64, tpu.core_type = #tpu.core_type<tc>, window_params = [{transform_indices = @transform_0, window_bounds = array<i64: 1, 4, 256>}, {pipeline_mode = #tpu.pipeline_mode<synchronous>, transform_indices = @transform_1, window_bounds = array<i64: 12, 4>}, {pipeline_mode = #tpu.pipeline_mode<synchronous>, transform_indices = @transform_2, window_bounds = array<i64: 12, 1>}, {transform_indices = @transform_3, window_bounds = array<i64: 1, 4, 256>}]} {
    %c0_i32 = arith.constant 0 : i32
    %0 = arith.cmpi eq, %arg1, %c0_i32 : i32
    %1 = arith.extui %0 : i1 to i32
    %c0_i32_0 = arith.constant 0 : i32
    %2 = arith.cmpi ne, %1, %c0_i32_0 : i32
    scf.if %2 {
      %cst_15 = arith.constant 0.000000e+00 : f32
      %24 = vector.broadcast %cst_15 : f32 to vector<4x4xf32>
      %c0_16 = arith.constant 0 : index
      %c0_17 = arith.constant 0 : index
      %25 = vector.load %arg6[%c0_16, %c0_17] : memref<4x4xf32, #tpu.memory_space<vmem>>, vector<4x4xf32>
      tpu.vector_store %arg6[%c0_16, %c0_17], %24 {strides = array<i32>} : memref<4x4xf32, #tpu.memory_space<vmem>>, vector<4x4xf32>,
    } else {
    }
    %c0 = arith.constant 0 : index
    %c0_1 = arith.constant 0 : index
    %c0_2 = arith.constant 0 : index
    %3 = vector.load %arg2[%c0, %c0_1, %c0_2] : memref<1x4x256xf32, #tpu.memory_space<vmem>>, vector<1x4x256xf32>
    %4 = vector.shape_cast %3 : vector<1x4x256xf32> to vector<4x256xf32>
    %c0_3 = arith.constant 0 : index
    %c0_4 = arith.constant 0 : index
    %5 = vector.load %arg3[%c0_3, %c0_4] : memref<12x4xf32, #tpu.memory_space<vmem>>, vector<12x4xf32>
    %cst = arith.constant dense<0.000000e+00> : vector<12x256xf32>
    %6 = tpu.matmul %5, %4, %cst {dimension_numbers = #tpu.dot_dimension_numbers<[1], [0], [0], [1], [0, 0, 1, 1], [], []>} : vector<12x4xf32>, vector<4x256xf32>, vector<12x256xf32> -> vector<12x256xf32>
    %c0_5 = arith.constant 0 : index
    %c0_6 = arith.constant 0 : index
    %7 = vector.load %arg4[%c0_5, %c0_6] : memref<12x1xf32, #tpu.memory_space<vmem>>, vector<12x1xf32>
    %8 = vector.broadcast %7 : vector<12x1xf32> to vector<12x256xf32>
    %9 = arith.addf %6, %8 : vector<12x256xf32>
    %10 = vector.extract_strided_slice %9 {offsets = [0, 0], sizes = [4, 256], strides = [1, 1]} : vector<12x256xf32> to vector<4x256xf32>
    %11 = vector.extract_strided_slice %9 {offsets = [4, 0], sizes = [4, 256], strides = [1, 1]} : vector<12x256xf32> to vector<4x256xf32>
    %12 = vector.extract_strided_slice %9 {offsets = [8, 0], sizes = [4, 256], strides = [1, 1]} : vector<12x256xf32> to vector<4x256xf32>
    %c0_7 = arith.constant 0 : index
    %c0_8 = arith.constant 0 : index
    %13 = vector.load %arg6[%c0_7, %c0_8] : memref<4x4xf32, #tpu.memory_space<vmem>>, vector<4x4xf32>
    %cst_9 = arith.constant dense<0.000000e+00> : vector<4x4xf32>
    %14 = tpu.matmul %10, %11, %cst_9 {dimension_numbers = #tpu.dot_dimension_numbers<[1], [1], [0], [0], [0, 0, 1, 0], [], []>} : vector<4x256xf32>, vector<4x256xf32>, vector<4x4xf32> -> vector<4x4xf32>
    %15 = arith.addf %13, %14 : vector<4x4xf32>
    %c0_10 = arith.constant 0 : index
    %c0_11 = arith.constant 0 : index
    %16 = vector.load %arg6[%c0_10, %c0_11] : memref<4x4xf32, #tpu.memory_space<vmem>>, vector<4x4xf32>
    tpu.vector_store %arg6[%c0_10, %c0_11], %15 {strides = array<i32>} : memref<4x4xf32, #tpu.memory_space<vmem>>, vector<4x4xf32>,
    %c256_i32 = arith.constant 256 : i32
    %17 = arith.muli %arg1, %c256_i32 : i32
    %18 = tpu.assume_multiple %17, 128 : i32
    %c0_12 = arith.constant 0 : index
    %19 = arith.index_cast %18 : i32 to index
    %20 = vector.load %arg7[%c0_12, %19] : memref<4x256xf32, #tpu.memory_space<vmem>>, vector<4x256xf32>
    tpu.vector_store %arg7[%c0_12, %19], %12 {strides = array<i32>} : memref<4x256xf32, #tpu.memory_space<vmem>>, vector<4x256xf32>,
    %c0_i32_13 = arith.constant 0 : i32
    %21 = arith.cmpi eq, %arg1, %c0_i32_13 : i32
    %22 = arith.extui %21 : i1 to i32
    %c0_i32_14 = arith.constant 0 : i32
    %23 = arith.cmpi ne, %22, %c0_i32_14 : i32
    scf.if %23 {
      %c0_15 = arith.constant 0 : index
      %c0_16 = arith.constant 0 : index
      %24 = vector.load %arg6[%c0_15, %c0_16] : memref<4x4xf32, #tpu.memory_space<vmem>>, vector<4x4xf32>
      %cst_17 = arith.constant dense<0xFF800000> : vector<4xf32>
      %25 = vector.multi_reduction <maximumf>, %24, %cst_17 [1] : vector<4x4xf32> to vector<4xf32>
      %26 = vector.shape_cast %25 : vector<4xf32> to vector<4x1xf32>
      %27 = vector.broadcast %26 : vector<4x1xf32> to vector<4x4xf32>
      %28 = arith.subf %24, %27 : vector<4x4xf32>
      %29 = math.exp %28 : vector<4x4xf32>
      %cst_18 = arith.constant dense<0.000000e+00> : vector<4xf32>
      %30 = vector.multi_reduction <add>, %29, %cst_18 [1] : vector<4x4xf32> to vector<4xf32>
      %31 = vector.shape_cast %30 : vector<4xf32> to vector<4x1xf32>
      %32 = vector.broadcast %31 : vector<4x1xf32> to vector<4x4xf32>
      %33 = arith.divf %29, %32 : vector<4x4xf32>
      %c0_19 = arith.constant 0 : index
      %c0_20 = arith.constant 0 : index
      %34 = vector.load %arg7[%c0_19, %c0_20] : memref<4x256xf32, #tpu.memory_space<vmem>>, vector<4x256xf32>
      %cst_21 = arith.constant dense<0.000000e+00> : vector<4x256xf32>
      %35 = tpu.matmul %33, %34, %cst_21 {dimension_numbers = #tpu.dot_dimension_numbers<[1], [0], [0], [1], [0, 0, 1, 1], [], []>} : vector<4x4xf32>, vector<4x256xf32>, vector<4x256xf32> -> vector<4x256xf32>
      %c0_22 = arith.constant 0 : index
      %c0_23 = arith.constant 0 : index
      %c0_24 = arith.constant 0 : index
      %36 = vector.load %arg5[%c0_22, %c0_23, %c0_24] : memref<1x4x256xf32, #tpu.memory_space<vmem>>, vector<1x4x256xf32>
      %37 = vector.shape_cast %36 : vector<1x4x256xf32> to vector<4x256xf32>
      %38 = vector.shape_cast %35 : vector<4x256xf32> to vector<1x4x256xf32>
      tpu.vector_store %arg5[%c0_22, %c0_23, %c0_24], %38 {strides = array<i32>} : memref<1x4x256xf32, #tpu.memory_space<vmem>>, vector<1x4x256xf32>,
    } else {
    }
    return
  }
  func.func @transform_0(%arg0: i32, %arg1: i32) -> (i32, i32, i32) {
    %c0_i32 = arith.constant 0 : i32
    %c0_i32_0 = arith.constant 0 : i32
    return %arg0, %c0_i32, %arg1 : i32, i32, i32
  }
  func.func @transform_1(%arg0: i32, %arg1: i32) -> (i32, i32) {
    %c0_i32 = arith.constant 0 : i32
    %c0_i32_0 = arith.constant 0 : i32
    %c0_i32_1 = arith.constant 0 : i32
    return %c0_i32, %c0_i32_0 : i32, i32
  }
  func.func @transform_2(%arg0: i32, %arg1: i32) -> (i32, i32) {
    %c0_i32 = arith.constant 0 : i32
    %c0_i32_0 = arith.constant 0 : i32
    %c0_i32_1 = arith.constant 0 : i32
    return %c0_i32, %c0_i32_0 : i32, i32
  }
  func.func @transform_3(%arg0: i32, %arg1: i32) -> (i32, i32, i32) {
    %c0_i32 = arith.constant 0 : i32
    %c0_i32_0 = arith.constant 0 : i32
    %c0_i32_1 = arith.constant 0 : i32
    return %arg0, %c0_i32, %c0_i32_0 : i32, i32, i32
  }
}

</mosaic_0001>

<bundles_post_ra>
// kernel: tpu_custom_call.1
= control target key start
LH: loop header
LB: loop body
LE: loop exit
PB: predicated region body
PF: predicated region fallthrough
CT: control target
= control target key end

     0   :  { %8 = vsyncpa [#allocation5], 0  ;;  %s834_s0 = inlined_call_operand.vmem [shape: f32[2,4,256], index: 0, kind: input, shape index: {}]   ;;  %s835_s1 = inlined_call_operand.vmem [shape: f32[12,4], index: 1, kind: input, shape index: {}]   ;;  %s836_s2 = inlined_call_operand.vmem [shape: f32[12,1], index: 2, kind: input, shape index: {}]   ;;  %s837_s3 = inlined_call_operand.hbm [shape: f32[2,4,256], index: 3, kind: output, shape index: {}]  }
   0x1   :  { %10 = vsyncpa [#allocation5 + $0x1], 0  ;;  %s709_s12 = smov 0   ;;  %s711_s13 = smov 0  }
   0x2   :  { %s713_s14 = smov 0   ;;  %s715_s15 = smov 0  }
   0x3   :  { %s717_s16 = smov 0   ;;  %s719_s17 = smov 0  }
   0x4 LB: > { %s519_s18 = sadd.s32 4294967295, %s685_s17   ;;  %s520_s19 = sadd.s32 4294967294, %s685_s17   ;;  %s685_s17 = sphi %s719_s17, %s16_s17   ;;  %s681_s16 = sphi %s717_s16, %s844_s16   ;;  %s677_s15 = sphi %s715_s15, %s843_s15   ;;  %s673_s14 = sphi %s713_s14, %s842_s14   ;;  %s669_s13 = sphi %s711_s13, %s841_s13   ;;  %s665_s12 = sphi %s709_s12, %s840_s12  }
   0x5   : > { %s28_s20 = sadd.s32 1, %s681_s16  ;;  %s105_s21 = sadd.s32 1, %s673_s14 }
   0x6   : > { %p30_p0 = scmp.ge.s32.totalorder %s28_s20, 2  ;;  %p115_p1 = scmp.ne.s32.totalorder %s673_s14, %s669_s13 }
   0x7   : > { %p116_p2 = scmp.eq.s32.totalorder %s519_s18, 1  ;;  %p121_p3 = scmp.ne.s32.totalorder %s669_s13, %s665_s12 }
   0x8   : > { %s846_s20 = smov (%p30_p0, %s28_s20), 0  ;;  %p122_p5 = scmp.eq.s32.totalorder %s520_s19, 1 }
   0x9   : > { %p749_p4 = por %p116_p2, %p115_p1  ;;  %s102_s23 = ssub.s32 %s681_s16, %s846_s20 }
   0xa   : > { %p523_p6 = scmp.ge.s32.totalorder %s685_s17, 1  ;;  %p103_p7 = scmp.eq.s32.totalorder %s102_s23, 0 }
   0xb   : > { %p756_p8 = por %p122_p5, %p121_p3  ;;  %p159_p9 = scmp.lt.s32.totalorder %s685_s17, 3 }
   0xc   : > { %s762_s25 = scalar_select %p103_p7, %s673_s14, %s105_s21  }
   0xd   : > { %p160_p10 = pnand %p523_p6, %p159_p9 }
   0xe   : > { %p188_p11 = scmp.lt.s32.totalorder (!%p160_p10), %s677_s15, 1  ;;  %s184_s18 = sand.u32 (!%p160_p10), 1, %s669_s13  }
   0xf   : > { %163 = sbr.rel (%p160_p10) target bundleno = 732 (0x2dc), region = 32  ;;  %s524_s19 = sshll.u32 (!%p160_p10), %s184_s18, 3 }
  0x10   : > { %s543_s21 = sshll.u32 (!%p160_p10), %s677_s15, 3  ;;  %s428_s4 = scalar_lea.sflag (!%p160_p10), [#allocation5], %s184_s18 }
  0x11   : > { %s439_s27 = scalar_lea.hbm (!%p160_p10), %s837_s3, %s543_s21  ;;  %s627_s8 = scalar_lea.hbm (!%p160_p10), %s837_s3, 16 }
  0x12   : > { %s443_s30 = sshll.u32 (!%p160_p10), %s439_s27, 4  ;;  %s444_s30 = int_to_ptr.hbm [resolvable:$true] %s443_s30 }
  0x14   : > { %v206_v0 = vld [vmem:[%s836_s2] sm:$0xff]  ;;  %v687_v1 = vmov 0   ;;  %s189_s28 = scalar_select %p188_p11, %s677_s15, 1  ;;  %vm229_vm0 = vcmask 1043456   ;;  %vm222_vm1 = vcmask 31744   ;;  %vm201_vm2 = vcmask 27648  }
  0x15   : > { %601 = vset.pattern.permute.xlu0 %v687_v1  ;;  %602 = vset.pattern.permute.xlu1 %v687_v1  ;;  %v204_v3 = vld [vmem:[%s835_s1] sm:$0xff]  ;;  %v688_v13 = vmov 0.0   ;;  %v205_v21 = vld [vmem:[%s835_s1 + $0x8] sm:$0xf] }
  0x16   : > { %210 = vperm.xlu0 %601, %v206_v0   ;;  %s542_s29 = sshll.u32 %s189_s28, 3  ;;  %202 = vst.msk [vmem:[#allocation2] sm:$0xf] %vm201_vm2, %v688_v13  ;;  %v207_v27 = vld [vmem:[%s836_s2 + $0x8] sm:$0xf]  ;;  %s186_s28 = scalar_lea.vmem [#allocation4], %s524_s19 }
  0x17   : > { %s195_s5 = scalar_lea.vmem %s834_s0, %s542_s29  ;;  %s441_s29 = sshll.u32 %s186_s28, 4  ;;  %s442_s29 = int_to_ptr.vmem [resolvable:$true] %s441_s29 }
  0x18   : > { %v203_v2 = vld [vmem:[%s195_s5] sm:$0xff]  ;;  %s621_s5 = sshra.s32 %s444_s30, 4  ;;  %s622_s5 = int_to_ptr.hbm [resolvable:$true] %s621_s5 }
  0x19   : > { %219 = vst [vmem:[#allocation1] ss:$2 sm:$0xff] %v203_v2  ;;  %s623_s15 = scalar_lea.hbm %s622_s5, 8  ;;  %p628_p1 = scmp.lt.s32.totalorder %s622_s5, %s837_s3 }
  0x1a   : > { %p624_p12 = scmp.ne.s32.totalorder %s622_s5, %s623_s15  ;;  %p629_p2 = scmp.lt.s32.totalorder %s627_s8, %s623_s15 }
  0x1c   : > { %p625_p13 = pnand %p624_p12, %p749_p4  ;;  %p630_p3 = por %p629_p2, %p628_p1 }
  0x1d   : > { %v280_v15 = vld [vmem:[#allocation2] sm:$0xf] }
  0x1e   : > { %p626_p0 = pneg %p625_p13 }
  0x20   : > { %v220_v4 = vld.sshfl [vmem:[#allocation1] sm:$0xff pattern:$0x75316420]  ;;  %v221_v5 = vld.sshfl [vmem:[#allocation1 + $0x8] sm:$0xff pattern:$0x75316420]  ;;  %p631_p5 = pnand %p630_p3, %p626_p0 }
  0x21   : > { %527 = vmatpush.msk.msra.mxu0 %vm229_vm0, %v220_v4  ;;  %530 = vmatpush.msk.msra.mxu1 %vm229_vm0, %v221_v5 }
  0x22   : > { %528 = vmatmul.msk.f32.vlgmr.msra.gmra.mxu0 %vm222_vm1, %v204_v3  ;;  %531 = vmatmul.msk.f32.vlgmr.msra.gmra.mxu1 %vm222_vm1, %v204_v3 }
  0x2a   : > { %529 = vmatmul.msk.f32.gmra.mxu0 %vm222_vm1, %v205_v21  ;;  %532 = vmatmul.msk.f32.gmra.mxu1 %vm222_vm1, %v205_v21 }
  0x88   : > { %v211_v6 = vpop.permute.xlu0 %210 }
  0x9f   : > { %v251_v7 = vpop.f32.mrf.mxu0  ;;  %v274_v8 = vpop.f32.mrf.mxu1 }
  0xa0   : > { %v252_v9 = vadd.f32 %v251_v7, %v211_v6  ;;  %v275_v10 = vadd.f32 %v274_v8, %v211_v6 }
  0xa2   : > { %v283_v11 = vrot.slane %v252_v9, 4  ;;  %v284_v12 = vrot.slane %v275_v10, 4 }
  0xa4   : > { %302 = vmatpush.xpose.msra.mxu2 %v283_v11  ;;  %322 = vmatpush.xpose.msra.mxu3 %v284_v12 }
  0xa7   : > { %303 = vmatmul.f32.vlgmr.msra.gmra.mxu2 %v252_v9  ;;  %323 = vmatmul.f32.vlgmr.msra.gmra.mxu3 %v275_v10  ;;  %v277_v32 = vpop.f32.mrf.mxu1  ;;  %v254_v34 = vpop.f32.mrf.mxu0 }
 0x12a   : > { %v304_v14 = vpop.f32.mrf.mxu2  ;;  %v324_v16 = vpop.f32.mrf.mxu3 }
 0x12b   : > { %v325_v17 = vadd.f32 %v324_v16, %v304_v14 }
 0x12d   : > { %v327_v18 = vadd.f32 %v325_v17, %v280_v15 }
 0x12f   : > { %329 = vst.msk [vmem:[#allocation2] sm:$0xf] %vm201_vm2, %v327_v18 }
 0x136   : > { %v344_v19 = vld [vmem:[#allocation2] sm:$0xf] }
 0x137   : > { %v345_v20 = vsel %vm201_vm2, %v344_v19, -inf }
 0x138   : > { %346 = vmax.xlane.f32.xlu0 %v345_v20 }
 0x1ab   : > { %v347_v22 = vpop.xlane.xlu0 %346 }
 0x1ac   : > { %v348_v23 = vsub.f32 %v344_v19, %v347_v22 }
 0x1ae   : > { %v349_v24 = vmul.f32 1.442695, %v348_v23 }
 0x1b0   : > { %603 = vpow2.f32 %v349_v24 }
 0x1b6   : > { %v604_v25 = vpop.eup %603 }
 0x1b7   : > { %v351_v26 = vsel %vm201_vm2, %v604_v25, 0.0 }
 0x1b8   : > { %352 = vadd.xlane.f32.xlu1 %v351_v26 }
 0x1d1   : > { %215 = vperm.xlu1 %602, %v207_v27  }
 0x22b   : > { %v353_v28 = vpop.xlane.xlu1 %352 }
 0x22c   : > { %605 = vrcp.f32 %v353_v28  ;;  %v365_v40 = vand.u32 2147483648, %v353_v28  ;;  %vm359_vm4 = vweird.f32 %v353_v28  ;;  %v363_v41 = vand.u32 2147483647, %v353_v28 }
 0x22e   : > { %v366_v44 = vor.u32 1.1754944e-38, %v365_v40  ;;  %vm364_vm6 = vcmp.eq.f32.partialorder %v363_v41, 8.507059e+37 }
 0x232   : > { %v606_v29 = vpop.eup %605 }
 0x233   : > { %v355_v30 = vmul.f32 %v606_v29, %v353_v28  ;;  %vm360_vm3 = vweird.f32 %v606_v29 }
 0x234   : > { %vm361_vm5 = vmor %vm359_vm4, %vm360_vm3 }
 0x235   : > { %v356_v31 = vsub.f32 1.0, %v355_v30 }
 0x237   : > { %v357_v33 = vmul.f32 %v606_v29, %v356_v31 }
 0x239   : > { %v358_v37 = vadd.f32 %v606_v29, %v357_v33 }
 0x23b   : > { %v362_v43 = vsel %vm361_vm5, %v606_v29, %v358_v37 }
 0x23c   : > { %v367_v45 = vsel %vm364_vm6, %v366_v44, %v362_v43 }
 0x23d   : > { %v368_v48 = vmul.f32 %v604_v25, %v367_v45 }
 0x243   : > { %v216_v35 = vpop.permute.xlu1 %215 }
 0x244   : > { %v278_v36 = vadd.f32 %v277_v32, %v216_v35  ;;  %v255_v38 = vadd.f32 %v254_v34, %v216_v35 }
 0x246   : > { %v333_v39 = vrot.slane %v278_v36, 4 }
 0x248   : > { %v334_v42 = vsel %vm229_vm0, %v255_v38, %v333_v39 }
 0x249   : > { %371 = vst [vmem:[#allocation1] ss:$2 sm:$0xff] %v334_v42 }
 0x250   : > { %v372_v46 = vld.sshfl [vmem:[#allocation1] sm:$0xff pattern:$0x75316420]  ;;  %v373_v47 = vld.sshfl [vmem:[#allocation1 + $0x8] sm:$0xff pattern:$0x75316420] }
 0x251   : > { %533 = vmatpush.msk.msrb.mxu2 %vm229_vm0, %v372_v46  ;;  %535 = vmatpush.msk.msrb.mxu3 %vm229_vm0, %v373_v47 }
 0x252   : > { %534 = vmatmul.msk.f32.vlgmr.msrb.gmra.mxu2 %vm222_vm1, %v368_v48  ;;  %536 = vmatmul.msk.f32.vlgmr.msrb.gmra.mxu3 %vm222_vm1, %v368_v48 }
 0x2d5   : > { %v418_v49 = vpop.f32.mrf.mxu3  ;;  %v398_v51 = vpop.f32.mrf.mxu2 }
 0x2d6   : > { %v423_v50 = vrot.slane %v418_v49, 4 }
 0x2d8   : > { %v424_v52 = vsel %vm229_vm0, %v398_v51, %v423_v50 }
 0x2d9   : > { %426 = vst [vmem:[%s186_s28] sm:$0xff] %v424_v52 }
 0x2da   : > { %634 = shalt.err (!%p631_p5)
}
 0x2db   : > { %544 = dma.vmem_to_hbm [thread:$0]  (%p749_p4), %s442_s29, 128, %s444_s30, %s428_s4  }
 0x2dc PF: > { %p550_p6 = scmp.ge.s32.totalorder %s685_s17, 2  ;;  %s455_s11 = sand.u32 1, %s665_s12  }
 0x2dd   : > { %s456_s18 = scalar_lea.sflag [#allocation5], %s455_s11 }
 0x2de   : > { %p547_p7 = pnand %p550_p6, %p756_p8 }
 0x2e0   : > { %p548_p9 = pneg %p547_p7 }
 0x2e2   : > { %660 = dma.done.wait (%p548_p9), %s456_s18, 128  }
 0x2e3   : > { %662 = vsyncadd (%p548_p9), %s456_s18, 4294967168  ;;  %s16_s17 = sadd.s32 1, %s685_s17   ;;  %s840_s12 = smov %s669_s13 }
 0x2e4   : > { %p13_p10 = scmp.ge.s32.totalorder %s16_s17, 4   ;;  %s841_s13 = smov %s673_s14 }
 0x2e5   : > { %s842_s14 = smov %s762_s25  ;;  %s843_s15 = smov %s681_s16 }
 0x2e6   : > { %s844_s16 = smov %s846_s20  ;;  %15 = sbr.rel (!%p13_p10) target bundleno = 4 (0x4), region = 76 }
 0x2eb   :  { %462 = vsyncpa [#allocation5], 1 }
 0x2ec   :  { %464 = vsyncpa [#allocation5 + $0x1], 1 }

</bundles_post_ra>
